<compile_context>
chip_gen: v5e
topology: v5e:2x2
jax: 0.10.0
libtpu: 0.0.40
codegen_flags: <defaults>
</compile_context>

<pallas_src>
import functools

import jax
import jax.numpy as jnp
from jax.experimental import pallas as pl
from jax.experimental.pallas import tpu as pltpu


# ----------------------------------------------------------------------------
# Kernel
# ----------------------------------------------------------------------------
def _make_fused_ae_kernel(num_layers, lane_dense):
    """Fuses `num_layers` Linear + LeakyReLU(0.01) layers into one kernel.

    Kernel ref layout: (x_ref, w0, b0, w1, b1, ..., o_ref).
    Weights are PyTorch-native (Dout, Din).

    lane_dense=True : activations are feature-major (D, TILE_B) -> batch on
                      the 128-lane axis (dense VPU / MXU-pop / stores).
    lane_dense=False: plain row-major (TILE_B, D) activations (safe fallback).
    """
    # Contract the LAST dims of both operands ("NT" form, MXU-native):
    #   A (m, k) x B (n, k) -> (m, n)
    _NT = (((1,), (1,)), ((), ()))

    def kernel(*refs):
        x_ref = refs[0]
        o_ref = refs[1 + 2 * num_layers]

        if lane_dense:
            # Layer 0 folds the (TILE_B, Din0) -> (Din0, TILE_B) transpose into
            # the matmul: W0 (Dout0, Din0) x x (TILE_B, Din0) -> (Dout0, TILE_B).
            h = jax.lax.dot_general(
                refs[1][...], x_ref[...],
                dimension_numbers=_NT,
                preferred_element_type=jnp.float32)
            h = h + refs[2][...]                      # bias (Dout0, 1), lane bcast
            h = jnp.where(h > 0, h, 0.01 * h)
            for l in range(1, num_layers):
                w = refs[1 + 2 * l][...]              # (Dout, Din)
                b = refs[2 + 2 * l][...]              # (Dout, 1)
                y = jnp.dot(w, h, preferred_element_type=jnp.float32)
                y = y + b
                h = jnp.where(y > 0, y, 0.01 * y)
            # Single transpose back to the row-major (TILE_B, Dout) output tile
            # (XLU slot; batch columns are independent so ragged-edge padding
            # never contaminates valid rows).
            o_ref[...] = h.T.astype(o_ref.dtype)
        else:
            h = x_ref[...]                            # (TILE_B, Din0)
            for l in range(num_layers):
                w = refs[1 + 2 * l][...]              # (Dout, Din)
                b = refs[2 + 2 * l][...]              # (1, Dout)
                y = jax.lax.dot_general(h, w, dimension_numbers=_NT,
                                        preferred_element_type=jnp.float32)
                y = y + b
                h = jnp.where(y > 0, y, 0.01 * y)
            o_ref[...] = h.astype(o_ref.dtype)

    return kernel


# ----------------------------------------------------------------------------
# Tiling heuristics + wrapper
# ----------------------------------------------------------------------------
_MAX_TILE_B = 8192  # (8192, 32) f32 tile = 1 MiB; double-buffered in+out ~ 4 MiB VMEM.


def _choose_tile_b(batch):
    """Batch-tile heuristic.

    * Big tiles amortize the ~0.35 us/grid-step overhead (kernel is
      overhead / HBM-stream bound, not MXU bound at these layer widths).
    * For large batches force >= 2 tiles so the "parallel" axis can shard
      across both v7x TensorCores (free on v5e/v6e).
    * Tiles are multiples of 8 sublanes; a ragged final tile is handled by the
      pl.cdiv grid (edge DMAs are clipped and every batch row/column of the
      computation is independent).
    """
    if batch <= 1024:
        return batch                          # one tile; block == full dim is legal
    tile = min(_MAX_TILE_B, -(-batch // 2))   # ceil(batch/2): >= 2 grid steps
    return max(8, (tile // 8) * 8)


def build_ae_forward_pallas(params, x, *, tile_b=None, lane_dense=True):
    """Fused forward: z = encoder(x); y = decoder(z); return y.

    params: {"encoder": [(W, b), ...], "decoder": [(W, b), ...]}
            with W stored PyTorch-native as (Dout, Din).
    x:      (B, input_dims[0]) activations.
    """
    layers = list(params["encoder"]) + list(params["decoder"])
    num_layers = len(layers)
    B, Din0 = x.shape
    Dout_final = layers[-1][0].shape[0]

    if tile_b is None:
        tile_b = _choose_tile_b(B)

    in_specs = [pl.BlockSpec((tile_b, Din0), lambda i: (i, 0))]
    flat_args = [x]
    for (w, b) in layers:
        dout, din = w.shape
        # Full-array weight/bias blocks with constant index_maps: the block
        # index never changes across grid steps, so Pallas fetches them once
        # and keeps them VMEM-resident (no per-step re-DMA).
        in_specs.append(pl.BlockSpec((dout, din), lambda i: (0, 0)))
        if lane_dense:
            flat_args += [w, b.reshape(dout, 1)]
            in_specs.append(pl.BlockSpec((dout, 1), lambda i: (0, 0)))
        else:
            flat_args += [w, b.reshape(1, dout)]
            in_specs.append(pl.BlockSpec((1, dout), lambda i: (0, 0)))

    grid = (pl.cdiv(B, tile_b),)

    return pl.pallas_call(
        _make_fused_ae_kernel(num_layers, lane_dense),
        out_shape=jax.ShapeDtypeStruct((B, Dout_final), x.dtype),
        grid=grid,
        in_specs=in_specs,
        out_specs=pl.BlockSpec((tile_b, Dout_final), lambda i: (i, 0)),
        compiler_params=pltpu.CompilerParams(
            dimension_semantics=("parallel",),  # batch tiles are independent
        ),
    )(*flat_args)


@functools.partial(jax.jit, static_argnames=("lane_dense",))
def build_ae_forward(params, x, lane_dense=True):
    return build_ae_forward_pallas(params, x, lane_dense=lane_dense)


# ----------------------------------------------------------------------------
# Params + pure-JAX reference
# ----------------------------------------------------------------------------
def init_build_ae_params(input_dims, key):
    """nn.Linear default init: W, b ~ U(-1/sqrt(fan_in), 1/sqrt(fan_in)).
    Weights are stored PyTorch-native as (Dout, Din)."""
    enc_pairs = list(zip(input_dims[:-1], input_dims[1:]))
    rev = list(reversed(input_dims))
    dec_pairs = list(zip(rev[:-1], rev[1:]))

    params = {"encoder": [], "decoder": []}
    for name, pairs in (("encoder", enc_pairs), ("decoder", dec_pairs)):
        for (din, dout) in pairs:
            key, kw, kb = jax.random.split(key, 3)
            bound = 1.0 / (din ** 0.5)
            w = jax.random.uniform(kw, (dout, din), jnp.float32, -bound, bound)
            b = jax.random.uniform(kb, (dout,), jnp.float32, -bound, bound)
            params[name].append((w, b))
    return params


def _reference_forward(params, x):
    h = x
    for (w, b) in list(params["encoder"]) + list(params["decoder"]):
        y = h @ w.T + b
        h = jnp.where(y > 0, y, 0.01 * y)
    return h


# ----------------------------------------------------------------------------
# Demo / self-test
# ----------------------------------------------------------------------------
if __name__ == "__main__":
    key = jax.random.PRNGKey(0)
    k_param, k_x = jax.random.split(key)

    # Architecture consistent with build_AE([32, 16, 8]):
    #   encoder: 32->16->8, decoder: 8->16->32  (4 fused Linear+LeakyReLU layers)
    input_dims = [32, 16, 8]
    batch = 64

    params = init_build_ae_params(input_dims, k_param)
    x = jax.random.normal(k_x, (batch, input_dims[0]), jnp.float32)

    try:
        y = jax.block_until_ready(build_ae_forward(params, x, lane_dense=True))
    except Exception:
        # Safety net: if this Mosaic build rejects the single in-kernel
        # transpose of the lane-dense variant, fall back to the mathematically
        # identical row-major kernel so the script still runs correctly.
        y = jax.block_until_ready(build_ae_forward(params, x, lane_dense=False))

    y_ref = _reference_forward(params, x)
    assert y.shape == (batch, input_dims[0])
    assert jnp.allclose(y, y_ref, atol=1e-5, rtol=1e-5), float(
        jnp.max(jnp.abs(y - y_ref)))

    print("KERNEL_OK")
</pallas_src>

<mosaic_0001>
module attributes {stable_mosaic.version = 11 : i64} {
  func.func @kernel(%arg0: i32, %arg1: memref<64x32xf32, #tpu.memory_space<vmem>>, %arg2: memref<16x32xf32, #tpu.memory_space<vmem>>, %arg3: memref<16x1xf32, #tpu.memory_space<vmem>>, %arg4: memref<8x16xf32, #tpu.memory_space<vmem>>, %arg5: memref<8x1xf32, #tpu.memory_space<vmem>>, %arg6: memref<16x8xf32, #tpu.memory_space<vmem>>, %arg7: memref<16x1xf32, #tpu.memory_space<vmem>>, %arg8: memref<32x16xf32, #tpu.memory_space<vmem>>, %arg9: memref<32x1xf32, #tpu.memory_space<vmem>>, %arg10: memref<64x32xf32, #tpu.memory_space<vmem>>) attributes {dimension_semantics = [#tpu.dimension_semantics<parallel>], iteration_bounds = array<i64: 1>, scalar_prefetch = 0 : i64, scratch_operands = 0 : i64, tpu.core_type = #tpu.core_type<tc>, window_params = [{transform_indices = @transform_0, window_bounds = array<i64: 64, 32>}, {pipeline_mode = #tpu.pipeline_mode<synchronous>, transform_indices = @transform_1, window_bounds = array<i64: 16, 32>}, {pipeline_mode = #tpu.pipeline_mode<synchronous>, transform_indices = @transform_2, window_bounds = array<i64: 16, 1>}, {pipeline_mode = #tpu.pipeline_mode<synchronous>, transform_indices = @transform_3, window_bounds = array<i64: 8, 16>}, {pipeline_mode = #tpu.pipeline_mode<synchronous>, transform_indices = @transform_4, window_bounds = array<i64: 8, 1>}, {pipeline_mode = #tpu.pipeline_mode<synchronous>, transform_indices = @transform_5, window_bounds = array<i64: 16, 8>}, {pipeline_mode = #tpu.pipeline_mode<synchronous>, transform_indices = @transform_6, window_bounds = array<i64: 16, 1>}, {pipeline_mode = #tpu.pipeline_mode<synchronous>, transform_indices = @transform_7, window_bounds = array<i64: 32, 16>}, {pipeline_mode = #tpu.pipeline_mode<synchronous>, transform_indices = @transform_8, window_bounds = array<i64: 32, 1>}, {transform_indices = @transform_9, window_bounds = array<i64: 64, 32>}]} {
    %c0 = arith.constant 0 : index
    %c0_0 = arith.constant 0 : index
    %0 = vector.load %arg2[%c0, %c0_0] : memref<16x32xf32, #tpu.memory_space<vmem>>, vector<16x32xf32>
    %c0_1 = arith.constant 0 : index
    %c0_2 = arith.constant 0 : index
    %1 = vector.load %arg1[%c0_1, %c0_2] : memref<64x32xf32, #tpu.memory_space<vmem>>, vector<64x32xf32>
    %cst = arith.constant dense<0.000000e+00> : vector<16x64xf32>
    %2 = tpu.matmul %0, %1, %cst {dimension_numbers = #tpu.dot_dimension_numbers<[1], [1], [0], [0], [0, 0, 1, 0], [], []>} : vector<16x32xf32>, vector<64x32xf32>, vector<16x64xf32> -> vector<16x64xf32>
    %c0_3 = arith.constant 0 : index
    %c0_4 = arith.constant 0 : index
    %3 = vector.load %arg3[%c0_3, %c0_4] : memref<16x1xf32, #tpu.memory_space<vmem>>, vector<16x1xf32>
    %4 = vector.broadcast %3 : vector<16x1xf32> to vector<16x64xf32>
    %5 = arith.addf %2, %4 : vector<16x64xf32>
    %cst_5 = arith.constant 0.000000e+00 : f32
    %6 = vector.broadcast %cst_5 : f32 to vector<16x64xf32>
    %7 = arith.cmpf ogt, %5, %6 : vector<16x64xf32>
    %cst_6 = arith.constant 0.00999999977 : f32
    %8 = vector.broadcast %cst_6 : f32 to vector<16x64xf32>
    %9 = arith.mulf %8, %5 : vector<16x64xf32>
    %10 = arith.select %7, %5, %9 : vector<16x64xi1>, vector<16x64xf32>
    %c0_7 = arith.constant 0 : index
    %c0_8 = arith.constant 0 : index
    %11 = vector.load %arg4[%c0_7, %c0_8] : memref<8x16xf32, #tpu.memory_space<vmem>>, vector<8x16xf32>
    %c0_9 = arith.constant 0 : index
    %c0_10 = arith.constant 0 : index
    %12 = vector.load %arg5[%c0_9, %c0_10] : memref<8x1xf32, #tpu.memory_space<vmem>>, vector<8x1xf32>
    %cst_11 = arith.constant dense<0.000000e+00> : vector<8x64xf32>
    %13 = tpu.matmul %11, %10, %cst_11 {dimension_numbers = #tpu.dot_dimension_numbers<[1], [0], [0], [1], [0, 0, 1, 1], [], []>} : vector<8x16xf32>, vector<16x64xf32>, vector<8x64xf32> -> vector<8x64xf32>
    %14 = vector.broadcast %12 : vector<8x1xf32> to vector<8x64xf32>
    %15 = arith.addf %13, %14 : vector<8x64xf32>
    %cst_12 = arith.constant 0.000000e+00 : f32
    %16 = vector.broadcast %cst_12 : f32 to vector<8x64xf32>
    %17 = arith.cmpf ogt, %15, %16 : vector<8x64xf32>
    %cst_13 = arith.constant 0.00999999977 : f32
    %18 = vector.broadcast %cst_13 : f32 to vector<8x64xf32>
    %19 = arith.mulf %18, %15 : vector<8x64xf32>
    %20 = arith.select %17, %15, %19 : vector<8x64xi1>, vector<8x64xf32>
    %c0_14 = arith.constant 0 : index
    %c0_15 = arith.constant 0 : index
    %21 = vector.load %arg6[%c0_14, %c0_15] : memref<16x8xf32, #tpu.memory_space<vmem>>, vector<16x8xf32>
    %c0_16 = arith.constant 0 : index
    %c0_17 = arith.constant 0 : index
    %22 = vector.load %arg7[%c0_16, %c0_17] : memref<16x1xf32, #tpu.memory_space<vmem>>, vector<16x1xf32>
    %cst_18 = arith.constant dense<0.000000e+00> : vector<16x64xf32>
    %23 = tpu.matmul %21, %20, %cst_18 {dimension_numbers = #tpu.dot_dimension_numbers<[1], [0], [0], [1], [0, 0, 1, 1], [], []>} : vector<16x8xf32>, vector<8x64xf32>, vector<16x64xf32> -> vector<16x64xf32>
    %24 = vector.broadcast %22 : vector<16x1xf32> to vector<16x64xf32>
    %25 = arith.addf %23, %24 : vector<16x64xf32>
    %cst_19 = arith.constant 0.000000e+00 : f32
    %26 = vector.broadcast %cst_19 : f32 to vector<16x64xf32>
    %27 = arith.cmpf ogt, %25, %26 : vector<16x64xf32>
    %cst_20 = arith.constant 0.00999999977 : f32
    %28 = vector.broadcast %cst_20 : f32 to vector<16x64xf32>
    %29 = arith.mulf %28, %25 : vector<16x64xf32>
    %30 = arith.select %27, %25, %29 : vector<16x64xi1>, vector<16x64xf32>
    %c0_21 = arith.constant 0 : index
    %c0_22 = arith.constant 0 : index
    %31 = vector.load %arg8[%c0_21, %c0_22] : memref<32x16xf32, #tpu.memory_space<vmem>>, vector<32x16xf32>
    %c0_23 = arith.constant 0 : index
    %c0_24 = arith.constant 0 : index
    %32 = vector.load %arg9[%c0_23, %c0_24] : memref<32x1xf32, #tpu.memory_space<vmem>>, vector<32x1xf32>
    %cst_25 = arith.constant dense<0.000000e+00> : vector<32x64xf32>
    %33 = tpu.matmul %31, %30, %cst_25 {dimension_numbers = #tpu.dot_dimension_numbers<[1], [0], [0], [1], [0, 0, 1, 1], [], []>} : vector<32x16xf32>, vector<16x64xf32>, vector<32x64xf32> -> vector<32x64xf32>
    %34 = vector.broadcast %32 : vector<32x1xf32> to vector<32x64xf32>
    %35 = arith.addf %33, %34 : vector<32x64xf32>
    %cst_26 = arith.constant 0.000000e+00 : f32
    %36 = vector.broadcast %cst_26 : f32 to vector<32x64xf32>
    %37 = arith.cmpf ogt, %35, %36 : vector<32x64xf32>
    %cst_27 = arith.constant 0.00999999977 : f32
    %38 = vector.broadcast %cst_27 : f32 to vector<32x64xf32>
    %39 = arith.mulf %38, %35 : vector<32x64xf32>
    %40 = arith.select %37, %35, %39 : vector<32x64xi1>, vector<32x64xf32>
    %41 = tpu.transpose %40, [1, 0] : vector<32x64xf32> -> vector<64x32xf32>
    %c0_28 = arith.constant 0 : index
    %c0_29 = arith.constant 0 : index
    %42 = vector.load %arg10[%c0_28, %c0_29] : memref<64x32xf32, #tpu.memory_space<vmem>>, vector<64x32xf32>
    tpu.vector_store %arg10[%c0_28, %c0_29], %41 {strides = array<i32>} : memref<64x32xf32, #tpu.memory_space<vmem>>, vector<64x32xf32>,
    return
  }
  func.func @transform_0(%arg0: i32) -> (i32, i32) {
    %c0_i32 = arith.constant 0 : i32
    %c0_i32_0 = arith.constant 0 : i32
    return %arg0, %c0_i32 : i32, i32
  }
  func.func @transform_1(%arg0: i32) -> (i32, i32) {
    %c0_i32 = arith.constant 0 : i32
    %c0_i32_0 = arith.constant 0 : i32
    %c0_i32_1 = arith.constant 0 : i32
    return %c0_i32, %c0_i32_0 : i32, i32
  }
  func.func @transform_2(%arg0: i32) -> (i32, i32) {
    %c0_i32 = arith.constant 0 : i32
    %c0_i32_0 = arith.constant 0 : i32
    %c0_i32_1 = arith.constant 0 : i32
    return %c0_i32, %c0_i32_0 : i32, i32
  }
  func.func @transform_3(%arg0: i32) -> (i32, i32) {
    %c0_i32 = arith.constant 0 : i32
    %c0_i32_0 = arith.constant 0 : i32
    %c0_i32_1 = arith.constant 0 : i32
    return %c0_i32, %c0_i32_0 : i32, i32
  }
  func.func @transform_4(%arg0: i32) -> (i32, i32) {
    %c0_i32 = arith.constant 0 : i32
    %c0_i32_0 = arith.constant 0 : i32
    %c0_i32_1 = arith.constant 0 : i32
    return %c0_i32, %c0_i32_0 : i32, i32
  }
  func.func @transform_5(%arg0: i32) -> (i32, i32) {
    %c0_i32 = arith.constant 0 : i32
    %c0_i32_0 = arith.constant 0 : i32
    %c0_i32_1 = arith.constant 0 : i32
    return %c0_i32, %c0_i32_0 : i32, i32
  }
  func.func @transform_6(%arg0: i32) -> (i32, i32) {
    %c0_i32 = arith.constant 0 : i32
    %c0_i32_0 = arith.constant 0 : i32
    %c0_i32_1 = arith.constant 0 : i32
    return %c0_i32, %c0_i32_0 : i32, i32
  }
  func.func @transform_7(%arg0: i32) -> (i32, i32) {
    %c0_i32 = arith.constant 0 : i32
    %c0_i32_0 = arith.constant 0 : i32
    %c0_i32_1 = arith.constant 0 : i32
    return %c0_i32, %c0_i32_0 : i32, i32
  }
  func.func @transform_8(%arg0: i32) -> (i32, i32) {
    %c0_i32 = arith.constant 0 : i32
    %c0_i32_0 = arith.constant 0 : i32
    %c0_i32_1 = arith.constant 0 : i32
    return %c0_i32, %c0_i32_0 : i32, i32
  }
  func.func @transform_9(%arg0: i32) -> (i32, i32) {
    %c0_i32 = arith.constant 0 : i32
    %c0_i32_0 = arith.constant 0 : i32
    return %arg0, %c0_i32 : i32, i32
  }
}

module attributes {stable_mosaic.version = 11 : i64} {
  func.func @kernel(%arg0: i32, %arg1: memref<64x32xf32, #tpu.memory_space<vmem>>, %arg2: memref<16x32xf32, #tpu.memory_space<vmem>>, %arg3: memref<1x16xf32, #tpu.memory_space<vmem>>, %arg4: memref<8x16xf32, #tpu.memory_space<vmem>>, %arg5: memref<1x8xf32, #tpu.memory_space<vmem>>, %arg6: memref<16x8xf32, #tpu.memory_space<vmem>>, %arg7: memref<1x16xf32, #tpu.memory_space<vmem>>, %arg8: memref<32x16xf32, #tpu.memory_space<vmem>>, %arg9: memref<1x32xf32, #tpu.memory_space<vmem>>, %arg10: memref<64x32xf32, #tpu.memory_space<vmem>>) attributes {dimension_semantics = [#tpu.dimension_semantics<parallel>], iteration_bounds = array<i64: 1>, scalar_prefetch = 0 : i64, scratch_operands = 0 : i64, tpu.core_type = #tpu.core_type<tc>, window_params = [{transform_indices = @transform_0, window_bounds = array<i64: 64, 32>}, {pipeline_mode = #tpu.pipeline_mode<synchronous>, transform_indices = @transform_1, window_bounds = array<i64: 16, 32>}, {pipeline_mode = #tpu.pipeline_mode<synchronous>, transform_indices = @transform_2, window_bounds = array<i64: 1, 16>}, {pipeline_mode = #tpu.pipeline_mode<synchronous>, transform_indices = @transform_3, window_bounds = array<i64: 8, 16>}, {pipeline_mode = #tpu.pipeline_mode<synchronous>, transform_indices = @transform_4, window_bounds = array<i64: 1, 8>}, {pipeline_mode = #tpu.pipeline_mode<synchronous>, transform_indices = @transform_5, window_bounds = array<i64: 16, 8>}, {pipeline_mode = #tpu.pipeline_mode<synchronous>, transform_indices = @transform_6, window_bounds = array<i64: 1, 16>}, {pipeline_mode = #tpu.pipeline_mode<synchronous>, transform_indices = @transform_7, window_bounds = array<i64: 32, 16>}, {pipeline_mode = #tpu.pipeline_mode<synchronous>, transform_indices = @transform_8, window_bounds = array<i64: 1, 32>}, {transform_indices = @transform_9, window_bounds = array<i64: 64, 32>}]} {
    %c0 = arith.constant 0 : index
    %c0_0 = arith.constant 0 : index
    %0 = vector.load %arg1[%c0, %c0_0] : memref<64x32xf32, #tpu.memory_space<vmem>>, vector<64x32xf32>
    %c0_1 = arith.constant 0 : index
    %c0_2 = arith.constant 0 : index
    %1 = vector.load %arg2[%c0_1, %c0_2] : memref<16x32xf32, #tpu.memory_space<vmem>>, vector<16x32xf32>
    %c0_3 = arith.constant 0 : index
    %c0_4 = arith.constant 0 : index
    %2 = vector.load %arg3[%c0_3, %c0_4] : memref<1x16xf32, #tpu.memory_space<vmem>>, vector<1x16xf32>
    %cst = arith.constant dense<0.000000e+00> : vector<64x16xf32>
    %3 = tpu.matmul %0, %1, %cst {dimension_numbers = #tpu.dot_dimension_numbers<[1], [1], [0], [0], [0, 0, 1, 0], [], []>} : vector<64x32xf32>, vector<16x32xf32>, vector<64x16xf32> -> vector<64x16xf32>
    %4 = vector.broadcast %2 : vector<1x16xf32> to vector<64x16xf32>
    %5 = arith.addf %3, %4 : vector<64x16xf32>
    %cst_5 = arith.constant 0.000000e+00 : f32
    %6 = vector.broadcast %cst_5 : f32 to vector<64x16xf32>
    %7 = arith.cmpf ogt, %5, %6 : vector<64x16xf32>
    %cst_6 = arith.constant 0.00999999977 : f32
    %8 = vector.broadcast %cst_6 : f32 to vector<64x16xf32>
    %9 = arith.mulf %8, %5 : vector<64x16xf32>
    %10 = arith.select %7, %5, %9 : vector<64x16xi1>, vector<64x16xf32>
    %c0_7 = arith.constant 0 : index
    %c0_8 = arith.constant 0 : index
    %11 = vector.load %arg4[%c0_7, %c0_8] : memref<8x16xf32, #tpu.memory_space<vmem>>, vector<8x16xf32>
    %c0_9 = arith.constant 0 : index
    %c0_10 = arith.constant 0 : index
    %12 = vector.load %arg5[%c0_9, %c0_10] : memref<1x8xf32, #tpu.memory_space<vmem>>, vector<1x8xf32>
    %cst_11 = arith.constant dense<0.000000e+00> : vector<64x8xf32>
    %13 = tpu.matmul %10, %11, %cst_11 {dimension_numbers = #tpu.dot_dimension_numbers<[1], [1], [0], [0], [0, 0, 1, 0], [], []>} : vector<64x16xf32>, vector<8x16xf32>, vector<64x8xf32> -> vector<64x8xf32>
    %14 = vector.broadcast %12 : vector<1x8xf32> to vector<64x8xf32>
    %15 = arith.addf %13, %14 : vector<64x8xf32>
    %cst_12 = arith.constant 0.000000e+00 : f32
    %16 = vector.broadcast %cst_12 : f32 to vector<64x8xf32>
    %17 = arith.cmpf ogt, %15, %16 : vector<64x8xf32>
    %cst_13 = arith.constant 0.00999999977 : f32
    %18 = vector.broadcast %cst_13 : f32 to vector<64x8xf32>
    %19 = arith.mulf %18, %15 : vector<64x8xf32>
    %20 = arith.select %17, %15, %19 : vector<64x8xi1>, vector<64x8xf32>
    %c0_14 = arith.constant 0 : index
    %c0_15 = arith.constant 0 : index
    %21 = vector.load %arg6[%c0_14, %c0_15] : memref<16x8xf32, #tpu.memory_space<vmem>>, vector<16x8xf32>
    %c0_16 = arith.constant 0 : index
    %c0_17 = arith.constant 0 : index
    %22 = vector.load %arg7[%c0_16, %c0_17] : memref<1x16xf32, #tpu.memory_space<vmem>>, vector<1x16xf32>
    %cst_18 = arith.constant dense<0.000000e+00> : vector<64x16xf32>
    %23 = tpu.matmul %20, %21, %cst_18 {dimension_numbers = #tpu.dot_dimension_numbers<[1], [1], [0], [0], [0, 0, 1, 0], [], []>} : vector<64x8xf32>, vector<16x8xf32>, vector<64x16xf32> -> vector<64x16xf32>
    %24 = vector.broadcast %22 : vector<1x16xf32> to vector<64x16xf32>
    %25 = arith.addf %23, %24 : vector<64x16xf32>
    %cst_19 = arith.constant 0.000000e+00 : f32
    %26 = vector.broadcast %cst_19 : f32 to vector<64x16xf32>
    %27 = arith.cmpf ogt, %25, %26 : vector<64x16xf32>
    %cst_20 = arith.constant 0.00999999977 : f32
    %28 = vector.broadcast %cst_20 : f32 to vector<64x16xf32>
    %29 = arith.mulf %28, %25 : vector<64x16xf32>
    %30 = arith.select %27, %25, %29 : vector<64x16xi1>, vector<64x16xf32>
    %c0_21 = arith.constant 0 : index
    %c0_22 = arith.constant 0 : index
    %31 = vector.load %arg8[%c0_21, %c0_22] : memref<32x16xf32, #tpu.memory_space<vmem>>, vector<32x16xf32>
    %c0_23 = arith.constant 0 : index
    %c0_24 = arith.constant 0 : index
    %32 = vector.load %arg9[%c0_23, %c0_24] : memref<1x32xf32, #tpu.memory_space<vmem>>, vector<1x32xf32>
    %cst_25 = arith.constant dense<0.000000e+00> : vector<64x32xf32>
    %33 = tpu.matmul %30, %31, %cst_25 {dimension_numbers = #tpu.dot_dimension_numbers<[1], [1], [0], [0], [0, 0, 1, 0], [], []>} : vector<64x16xf32>, vector<32x16xf32>, vector<64x32xf32> -> vector<64x32xf32>
    %34 = vector.broadcast %32 : vector<1x32xf32> to vector<64x32xf32>
    %35 = arith.addf %33, %34 : vector<64x32xf32>
    %cst_26 = arith.constant 0.000000e+00 : f32
    %36 = vector.broadcast %cst_26 : f32 to vector<64x32xf32>
    %37 = arith.cmpf ogt, %35, %36 : vector<64x32xf32>
    %cst_27 = arith.constant 0.00999999977 : f32
    %38 = vector.broadcast %cst_27 : f32 to vector<64x32xf32>
    %39 = arith.mulf %38, %35 : vector<64x32xf32>
    %40 = arith.select %37, %35, %39 : vector<64x32xi1>, vector<64x32xf32>
    %c0_28 = arith.constant 0 : index
    %c0_29 = arith.constant 0 : index
    %41 = vector.load %arg10[%c0_28, %c0_29] : memref<64x32xf32, #tpu.memory_space<vmem>>, vector<64x32xf32>
    tpu.vector_store %arg10[%c0_28, %c0_29], %40 {strides = array<i32>} : memref<64x32xf32, #tpu.memory_space<vmem>>, vector<64x32xf32>,
    return
  }
  func.func @transform_0(%arg0: i32) -> (i32, i32) {
    %c0_i32 = arith.constant 0 : i32
    %c0_i32_0 = arith.constant 0 : i32
    return %arg0, %c0_i32 : i32, i32
  }
  func.func @transform_1(%arg0: i32) -> (i32, i32) {
    %c0_i32 = arith.constant 0 : i32
    %c0_i32_0 = arith.constant 0 : i32
    %c0_i32_1 = arith.constant 0 : i32
    return %c0_i32, %c0_i32_0 : i32, i32
  }
  func.func @transform_2(%arg0: i32) -> (i32, i32) {
    %c0_i32 = arith.constant 0 : i32
    %c0_i32_0 = arith.constant 0 : i32
    %c0_i32_1 = arith.constant 0 : i32
    return %c0_i32, %c0_i32_0 : i32, i32
  }
  func.func @transform_3(%arg0: i32) -> (i32, i32) {
    %c0_i32 = arith.constant 0 : i32
    %c0_i32_0 = arith.constant 0 : i32
    %c0_i32_1 = arith.constant 0 : i32
    return %c0_i32, %c0_i32_0 : i32, i32
  }
  func.func @transform_4(%arg0: i32) -> (i32, i32) {
    %c0_i32 = arith.constant 0 : i32
    %c0_i32_0 = arith.constant 0 : i32
    %c0_i32_1 = arith.constant 0 : i32
    return %c0_i32, %c0_i32_0 : i32, i32
  }
  func.func @transform_5(%arg0: i32) -> (i32, i32) {
    %c0_i32 = arith.constant 0 : i32
    %c0_i32_0 = arith.constant 0 : i32
    %c0_i32_1 = arith.constant 0 : i32
    return %c0_i32, %c0_i32_0 : i32, i32
  }
  func.func @transform_6(%arg0: i32) -> (i32, i32) {
    %c0_i32 = arith.constant 0 : i32
    %c0_i32_0 = arith.constant 0 : i32
    %c0_i32_1 = arith.constant 0 : i32
    return %c0_i32, %c0_i32_0 : i32, i32
  }
  func.func @transform_7(%arg0: i32) -> (i32, i32) {
    %c0_i32 = arith.constant 0 : i32
    %c0_i32_0 = arith.constant 0 : i32
    %c0_i32_1 = arith.constant 0 : i32
    return %c0_i32, %c0_i32_0 : i32, i32
  }
  func.func @transform_8(%arg0: i32) -> (i32, i32) {
    %c0_i32 = arith.constant 0 : i32
    %c0_i32_0 = arith.constant 0 : i32
    %c0_i32_1 = arith.constant 0 : i32
    return %c0_i32, %c0_i32_0 : i32, i32
  }
  func.func @transform_9(%arg0: i32) -> (i32, i32) {
    %c0_i32 = arith.constant 0 : i32
    %c0_i32_0 = arith.constant 0 : i32
    return %arg0, %c0_i32 : i32, i32
  }
}

</mosaic_0001>

<bundles_post_ra>
// kernel: build_ae_forward.1
= control target key start
LH: loop header
LB: loop body
LE: loop exit
PB: predicated region body
PF: predicated region fallthrough
CT: control target
= control target key end

     0   :  { %vm54_vm0 = vcmask 261120   ;;  %v345_v1 = vmov 0   ;;  %vm121_vm3 = vcmask 130048   ;;  %vm162_vm5 = vcmask 64512   ;;  %s521_s0 = inlined_call_operand.vmem [shape: f32[64,32], index: 0, kind: input, shape index: {}]   ;;  %s522_s2 = inlined_call_operand.vmem [shape: f32[16,1], index: 2, kind: input, shape index: {}]   ;;  %s523_s8 = inlined_call_operand.vmem [shape: f32[32,1], index: 8, kind: input, shape index: {}]   ;;  %s524_s1 = inlined_call_operand.vmem [shape: f32[16,32], index: 1, kind: input, shape index: {}]   ;;  %s525_s4 = inlined_call_operand.vmem [shape: f32[8,1], index: 4, kind: input, shape index: {}]   ;;  %s526_s6 = inlined_call_operand.vmem [shape: f32[16,1], index: 6, kind: input, shape index: {}]   ;;  %s527_s3 = inlined_call_operand.vmem [shape: f32[8,16], index: 3, kind: input, shape index: {}]   ;;  %s528_s5 = inlined_call_operand.vmem [shape: f32[16,8], index: 5, kind: input, shape index: {}]   ;;  %s529_s7 = inlined_call_operand.vmem [shape: f32[32,16], index: 7, kind: input, shape index: {}]   ;;  %s530_s9 = inlined_call_operand.vmem [shape: f32[64,32], index: 9, kind: output, shape index: {}]  }
   0x1   :  { %v41_v0 = vld [vmem:[%s521_s0 + $0x38] sm:$0xff]  ;;  %342 = vset.pattern.permute.xlu0 %v345_v1  ;;  %343 = vset.pattern.permute.xlu1 %v345_v1  ;;  %v40_v2 = vld [vmem:[%s521_s0 + $0x30] sm:$0xff]  ;;  %v43_v3 = vld [vmem:[%s522_s2 + $0x8] sm:$0xff] }
   0x2   :  { %323 = vmatpush.xpose.msk.msra.mxu0 %vm54_vm0, %v41_v0  ;;  %344 = vset.pattern.permute.xlu2 %v345_v1  ;;  %v39_v4 = vld [vmem:[%s521_s0 + $0x28] sm:$0xff]  ;;  %v42_v5 = vld [vmem:[%s522_s2] sm:$0xff]  ;;  %v37_v7 = vld [vmem:[%s521_s0 + $0x18] sm:$0xff] }
   0x3   :  { %51 = vperm.xlu0 %342, %v43_v3   ;;  %v38_v6 = vld [vmem:[%s521_s0 + $0x20] sm:$0xff]  ;;  %v203_v8 = vld [vmem:[%s523_s8 + $0x8] sm:$0xff]  ;;  %v36_v9 = vld [vmem:[%s521_s0 + $0x10] sm:$0xff] }
   0x4   :  { %v35_v10 = vld [vmem:[%s521_s0 + $0x8] sm:$0xff]  ;;  %v34_v11 = vld [vmem:[%s521_s0] sm:$0xff]  ;;  %v204_v16 = vld [vmem:[%s523_s8 + $0x10] sm:$0xff] }
   0x5   :  { %v32_v12 = vld [vmem:[%s524_s1] sm:$0xff]  ;;  %v33_v13 = vld [vmem:[%s524_s1 + $0x8] sm:$0xff]  ;;  %v205_v30 = vld [vmem:[%s523_s8 + $0x18] sm:$0xff] }
   0x6   :  { %324 = vmatpush.xpose.msk.msra.mxu0 %vm54_vm0, %v40_v2  ;;  %v115_v14 = vld [vmem:[%s525_s4] sm:$0xff]  ;;  %v151_v15 = vld [vmem:[%s526_s6 + $0x8] sm:$0xff]  ;;  %v200_v50 = vld [vmem:[%s529_s7 + $0x10] sm:$0xff] }
   0x7   :  { %118 = vperm.xlu1 %343, %v115_v14   ;;  %v114_v26 = vld [vmem:[%s527_s3] sm:$0xff]  ;;  %v149_v37 = vld [vmem:[%s528_s5 + $0x8] sm:$0xff]  ;;  %v201_v51 = vld [vmem:[%s529_s7 + $0x18] sm:$0xff] }
   0x8   :  { %v150_v28 = vld [vmem:[%s526_s6] sm:$0xff]  ;;  %v199_v49 = vld [vmem:[%s529_s7 + $0x8] sm:$0xff] }
   0x9   :  { %154 = vperm.xlu2 %344, %v150_v28   ;;  %v202_v29 = vld [vmem:[%s523_s8] sm:$0xff] }
   0xa   :  { %325 = vmatpush.xpose.msk.msra.mxu0 %vm54_vm0, %v39_v4  ;;  %v148_v35 = vld [vmem:[%s528_s5] sm:$0xff] }
   0xb   :  { %46 = vperm.xlu0 %342, %v42_v5   ;;  %v198_v47 = vld [vmem:[%s529_s7] sm:$0xff] }
   0xe   :  { %326 = vmatpush.xpose.msk.msra.mxu0 %vm54_vm0, %v38_v6 }
   0xf   :  { %159 = vperm.xlu1 %343, %v151_v15  }
  0x11   :  { %208 = vperm.xlu2 %344, %v202_v29  }
  0x12   :  { %327 = vmatpush.xpose.msk.msra.mxu0 %vm54_vm0, %v37_v7 }
  0x13   :  { %213 = vperm.xlu0 %342, %v203_v8  }
  0x16   :  { %328 = vmatpush.xpose.msk.msra.mxu0 %vm54_vm0, %v36_v9 }
  0x17   :  { %218 = vperm.xlu1 %343, %v204_v16  }
  0x19   :  { %223 = vperm.xlu2 %344, %v205_v30  }
  0x1a   :  { %329 = vmatpush.xpose.msk.msra.mxu0 %vm54_vm0, %v35_v10 }
  0x1e   :  { %330 = vmatpush.xpose.msk.msra.mxu0 %vm54_vm0, %v34_v11 }
  0x21   :  { %331 = vmatmul.msk.f32.vlgmr.msra.gmra.mxu0 %vm54_vm0, %v32_v12 }
  0x29   :  { %332 = vmatmul.msk.f32.gmra.mxu0 %vm54_vm0, %v33_v13 }
  0x63   :  { %v155_v39 = vpop.permute.xlu2 %154 }
  0x6b   :  { %v209_v52 = vpop.permute.xlu2 %208 }
  0x73   :  { %v224_v3 = vpop.permute.xlu2 %223 }
  0x75   :  { %v52_v17 = vpop.permute.xlu0 %51 }
  0x79   :  { %v119_v31 = vpop.permute.xlu1 %118 }
  0x7d   :  { %v47_v19 = vpop.permute.xlu0 %46 }
  0x81   :  { %v160_v41 = vpop.permute.xlu1 %159 }
  0x85   :  { %v214_v57 = vpop.permute.xlu0 %213 }
  0x89   :  { %v219_v62 = vpop.permute.xlu1 %218 }
  0x9e   :  { %v102_v18 = vpop.f32.mrf.mxu0 }
  0x9f   :  { %v103_v20 = vadd.f32 %v102_v18, %v47_v19 }
  0xa1   :  { %v110_v24 = vmul.f32 0.01, %v103_v20  ;;  %vm108_vm2 = vcmp.gt.f32.partialorder %v103_v20, 0.0 }
  0xa3   :  { %v112_v27 = vsel %vm108_vm2, %v103_v20, %v110_v24 }
  0xa6   :  { %v105_v21 = vpop.f32.mrf.mxu0 }
  0xa7   :  { %v106_v22 = vadd.f32 %v105_v21, %v52_v17 }
  0xa9   :  { %vm109_vm1 = vcmp.gt.f32.partialorder %v106_v22, 0.0  ;;  %v111_v23 = vmul.f32 0.01, %v106_v22 }
  0xab   :  { %v113_v25 = vsel %vm109_vm1, %v106_v22, %v111_v23 }
  0xac   :  { %139 = vmatpush.msra.mxu1 %v113_v25 }
  0xae   :  { %140 = vmatpush.msra.mxu1 %v112_v27 }
  0xaf   :  { %333 = vmatmul.msk.f32.vlgmr.msra.gmra.mxu1 %vm121_vm3, %v114_v26 }
 0x12c   :  { %v142_v32 = vpop.f32.mrf.mxu1 }
 0x12d   :  { %v143_v33 = vadd.f32 %v142_v32, %v119_v31 }
 0x12f   :  { %vm145_vm4 = vcmp.gt.f32.partialorder %v143_v33, 0.0  ;;  %v146_v34 = vmul.f32 0.01, %v143_v33 }
 0x131   :  { %v147_v36 = vsel %vm145_vm4, %v143_v33, %v146_v34 }
 0x132   :  { %184 = vmatpush.msra.mxu2 %v147_v36 }
 0x133   :  { %334 = vmatmul.msk.f32.vlgmr.msra.gmra.mxu2 %vm162_vm5, %v148_v35 }
 0x13b   :  { %335 = vmatmul.msk.f32.gmra.mxu2 %vm162_vm5, %v149_v37 }
 0x1b6   :  { %v186_v38 = vpop.f32.mrf.mxu2 }
 0x1b7   :  { %v187_v40 = vadd.f32 %v186_v38, %v155_v39 }
 0x1b9   :  { %v194_v45 = vmul.f32 0.01, %v187_v40  ;;  %vm192_vm7 = vcmp.gt.f32.partialorder %v187_v40, 0.0 }
 0x1bb   :  { %v196_v48 = vsel %vm192_vm7, %v187_v40, %v194_v45 }
 0x1be   :  { %v189_v42 = vpop.f32.mrf.mxu2 }
 0x1bf   :  { %v190_v43 = vadd.f32 %v189_v42, %v160_v41 }
 0x1c1   :  { %vm193_vm6 = vcmp.gt.f32.partialorder %v190_v43, 0.0  ;;  %v195_v44 = vmul.f32 0.01, %v190_v43 }
 0x1c3   :  { %v197_v46 = vsel %vm193_vm6, %v190_v43, %v195_v44 }
 0x1c4   :  { %252 = vmatpush.msra.mxu3 %v197_v46 }
 0x1c6   :  { %253 = vmatpush.msra.mxu3 %v196_v48 }
 0x1c7   :  { %336 = vmatmul.msk.f32.vlgmr.msra.gmra.mxu3 %vm121_vm3, %v198_v47 }
 0x1cf   :  { %337 = vmatmul.msk.f32.gmra.mxu3 %vm121_vm3, %v199_v49 }
 0x1d7   :  { %338 = vmatmul.msk.f32.gmra.mxu3 %vm121_vm3, %v200_v50 }
 0x1df   :  { %339 = vmatmul.msk.f32.gmra.mxu3 %vm121_vm3, %v201_v51 }
 0x24a   :  { %v255_v53 = vpop.f32.mrf.mxu3 }
 0x24b   :  { %v256_v54 = vadd.f32 %v255_v53, %v209_v52 }
 0x24d   :  { %v271_v55 = vmul.f32 0.01, %v256_v54  ;;  %vm267_vm8 = vcmp.gt.f32.partialorder %v256_v54, 0.0 }
 0x24f   :  { %v275_v56 = vsel %vm267_vm8, %v256_v54, %v271_v55 }
 0x250   :  { %279 = vxpose.xlu0.b32.start [1/4] (short) (narrow) %v275_v56, 64 }
 0x252   :  { %v258_v58 = vpop.f32.mrf.mxu3 }
 0x253   :  { %v259_v59 = vadd.f32 %v258_v58, %v214_v57 }
 0x255   :  { %vm268_vm9 = vcmp.gt.f32.partialorder %v259_v59, 0.0  ;;  %v272_v60 = vmul.f32 0.01, %v259_v59 }
 0x257   :  { %v276_v61 = vsel %vm268_vm9, %v259_v59, %v272_v60 }
 0x258   :  { %280 = vxpose.xlu0.b32.cont [2/4] (short) (narrow) %v276_v61, 64 }
 0x25a   :  { %v261_v63 = vpop.f32.mrf.mxu3 }
 0x25b   :  { %v262_v0 = vadd.f32 %v261_v63, %v219_v62 }
 0x25d   :  { %vm269_vm10 = vcmp.gt.f32.partialorder %v262_v0, 0.0  ;;  %v273_v1 = vmul.f32 0.01, %v262_v0 }
 0x25f   :  { %v277_v2 = vsel %vm269_vm10, %v262_v0, %v273_v1 }
 0x260   :  { %281 = vxpose.xlu0.b32.cont [3/4] (short) (narrow) %v277_v2, 64 }
 0x262   :  { %v264_v4 = vpop.f32.mrf.mxu3 }
 0x263   :  { %v265_v5 = vadd.f32 %v264_v4, %v224_v3 }
 0x265   :  { %vm270_vm11 = vcmp.gt.f32.partialorder %v265_v5, 0.0  ;;  %v274_v6 = vmul.f32 0.01, %v265_v5 }
 0x267   :  { %v278_v7 = vsel %vm270_vm11, %v265_v5, %v274_v6 }
 0x268   :  { %282 = vxpose.xlu0.b32.end [4/4] (short) (narrow) %v278_v7, 64 }
 0x2f4   :  { %v295_v8 = vpop.trf.xlu0 }
 0x2f5   :  { %311 = vst.msk [vmem:[%s530_s9] sm:$0xff] %vm54_vm0, %v295_v8 }
 0x2fc   :  { %v296_v9 = vpop.trf.xlu0 }
 0x2fd   :  { %312 = vst.msk [vmem:[%s530_s9 + $0x8] sm:$0xff] %vm54_vm0, %v296_v9 }
 0x304   :  { %v297_v10 = vpop.trf.xlu0 }
 0x305   :  { %313 = vst.msk [vmem:[%s530_s9 + $0x10] sm:$0xff] %vm54_vm0, %v297_v10 }
 0x30c   :  { %v298_v11 = vpop.trf.xlu0 }
 0x30d   :  { %314 = vst.msk [vmem:[%s530_s9 + $0x18] sm:$0xff] %vm54_vm0, %v298_v11 }
 0x314   :  { %v299_v12 = vpop.trf.xlu0 }
 0x315   :  { %315 = vst.msk [vmem:[%s530_s9 + $0x20] sm:$0xff] %vm54_vm0, %v299_v12 }
 0x31c   :  { %v300_v13 = vpop.trf.xlu0 }
 0x31d   :  { %316 = vst.msk [vmem:[%s530_s9 + $0x28] sm:$0xff] %vm54_vm0, %v300_v13 }
 0x324   :  { %v301_v14 = vpop.trf.xlu0 }
 0x325   :  { %317 = vst.msk [vmem:[%s530_s9 + $0x30] sm:$0xff] %vm54_vm0, %v301_v14 }
 0x32c   :  { %v302_v15 = vpop.trf.xlu0 }
 0x32d   :  { %318 = vst.msk [vmem:[%s530_s9 + $0x38] sm:$0xff] %vm54_vm0, %v302_v15 }

// kernel: build_ae_forward.1
= control target key start
LH: loop header
LB: loop body
LE: loop exit
PB: predicated region body
PF: predicated region fallthrough
CT: control target
= control target key end

     0   :  { %vm46_vm0 = vcmask 261120   ;;  %vm147_vm1 = vcmask 130048   ;;  %vm246_vm6 = vcmask 64512   ;;  %s694_s1 = inlined_call_operand.vmem [shape: f32[16,32], index: 1, kind: input, shape index: {}]   ;;  %s695_s2 = inlined_call_operand.vmem [shape: f32[1,16], index: 2, kind: input, shape index: {}]   ;;  %s696_s0 = inlined_call_operand.vmem [shape: f32[64,32], index: 0, kind: input, shape index: {}]   ;;  %s697_s4 = inlined_call_operand.vmem [shape: f32[1,8], index: 4, kind: input, shape index: {}]   ;;  %s698_s3 = inlined_call_operand.vmem [shape: f32[8,16], index: 3, kind: input, shape index: {}]   ;;  %s699_s5 = inlined_call_operand.vmem [shape: f32[16,8], index: 5, kind: input, shape index: {}]   ;;  %s700_s6 = inlined_call_operand.vmem [shape: f32[1,16], index: 6, kind: input, shape index: {}]   ;;  %s701_s7 = inlined_call_operand.vmem [shape: f32[32,16], index: 7, kind: input, shape index: {}]   ;;  %s702_s8 = inlined_call_operand.vmem [shape: f32[1,32], index: 8, kind: input, shape index: {}]   ;;  %s703_s9 = inlined_call_operand.vmem [shape: f32[64,32], index: 9, kind: output, shape index: {}]  }
   0x1   :  { %v41_v0 = vld [vmem:[%s694_s1 + $0x8] sm:$0xff]  ;;  %v40_v1 = vld [vmem:[%s694_s1] sm:$0xff]  ;;  %v34_v4 = vld [vmem:[%s696_s0 + $0x10] sm:$0xff] }
   0x2   :  { %463 = vmatpush.xpose.msk.msra.mxu0 %vm46_vm0, %v41_v0  ;;  %v32_v2 = vld [vmem:[%s696_s0] sm:$0xff]  ;;  %v33_v3 = vld [vmem:[%s696_s0 + $0x8] sm:$0xff]  ;;  %v35_v5 = vld [vmem:[%s696_s0 + $0x18] sm:$0xff] }
   0x3   :  { %v36_v6 = vld [vmem:[%s696_s0 + $0x20] sm:$0xff]  ;;  %v37_v7 = vld [vmem:[%s696_s0 + $0x28] sm:$0xff]  ;;  %v38_v8 = vld [vmem:[%s696_s0 + $0x30] sm:$0xff] }
   0x4   :  { %v39_v9 = vld [vmem:[%s696_s0 + $0x38] sm:$0xff]  ;;  %v142_v10 = vld [vmem:[%s698_s3] sm:$0xff]  ;;  %v241_v28 = vld [vmem:[%s699_s5 + $0x8] sm:$0xff] }
   0x5   :  { %473 = vmatpush.xpose.msk.msra.mxu1 %vm147_vm1, %v142_v10  ;;  %v504_v11 = vld [vmem:[%s695_s2] ss:$0 sm:$0xff]  ;;  %482 = vmatpush.xpose.msk.msra.mxu2 %vm246_vm6, %v241_v28  ;;  %v345_v63 = vld [vmem:[%s701_s7 + $0x18] sm:$0xff] }
   0x6   :  { %464 = vmatpush.xpose.msk.msra.mxu0 %vm46_vm0, %v40_v1  ;;  %v240_v45 = vld [vmem:[%s699_s5] sm:$0xff]  ;;  %492 = vmatpush.xpose.msk.msra.mxu3 %vm147_vm1, %v345_v63  ;;  %v344_v1 = vld [vmem:[%s701_s7 + $0x10] sm:$0xff] }
   0x7   :  { %v505_v46 = vld [vmem:[%s697_s4] ss:$0 sm:$0xff] }
   0x9   :  { %465 = vmatmul.msk.f32.vlgmr.msra.gmra.mxu0 %vm46_vm0, %v32_v2  ;;  %483 = vmatpush.xpose.msk.msra.mxu2 %vm246_vm6, %v240_v45 }
   0xa   :  { %493 = vmatpush.xpose.msk.msra.mxu3 %vm147_vm1, %v344_v1 }
  0x11   :  { %466 = vmatmul.msk.f32.gmra.mxu0 %vm46_vm0, %v33_v3 }
  0x19   :  { %467 = vmatmul.msk.f32.gmra.mxu0 %vm46_vm0, %v34_v4  ;;  %v343_v4 = vld [vmem:[%s701_s7 + $0x8] sm:$0xff] }
  0x1a   :  { %494 = vmatpush.xpose.msk.msra.mxu3 %vm147_vm1, %v343_v4 }
  0x21   :  { %468 = vmatmul.msk.f32.gmra.mxu0 %vm46_vm0, %v35_v5 }
  0x29   :  { %469 = vmatmul.msk.f32.gmra.mxu0 %vm46_vm0, %v36_v6 }
  0x31   :  { %470 = vmatmul.msk.f32.gmra.mxu0 %vm46_vm0, %v37_v7 }
  0x39   :  { %471 = vmatmul.msk.f32.gmra.mxu0 %vm46_vm0, %v38_v8 }
  0x41   :  { %472 = vmatmul.msk.f32.gmra.mxu0 %vm46_vm0, %v39_v9 }
  0x86   :  { %v94_v12 = vpop.f32.mrf.mxu0 }
  0x87   :  { %v95_v13 = vadd.f32 %v504_v11, %v94_v12 }
  0x89   :  { %v126_v14 = vmul.f32 0.01, %v95_v13  ;;  %vm118_vm2 = vcmp.gt.f32.partialorder %v95_v13, 0.0 }
  0x8b   :  { %v134_v15 = vsel %vm118_vm2, %v95_v13, %v126_v14 }
  0x8c   :  { %474 = vmatmul.msk.f32.vlgmr.msra.gmra.mxu1 %vm147_vm1, %v134_v15 }
  0x8e   :  { %v97_v16 = vpop.f32.mrf.mxu0 }
  0x8f   :  { %v98_v17 = vadd.f32 %v504_v11, %v97_v16 }
  0x91   :  { %v127_v18 = vmul.f32 0.01, %v98_v17  ;;  %vm119_vm3 = vcmp.gt.f32.partialorder %v98_v17, 0.0 }
  0x93   :  { %v135_v19 = vsel %vm119_vm3, %v98_v17, %v127_v18  ;;  %v342_v18 = vld [vmem:[%s701_s7] sm:$0xff] }
  0x94   :  { %475 = vmatmul.msk.f32.gmra.mxu1 %vm147_vm1, %v135_v19  ;;  %495 = vmatpush.xpose.msk.msra.mxu3 %vm147_vm1, %v342_v18  ;;  %v506_v19 = vld [vmem:[%s700_s6] ss:$0 sm:$0xff] }
  0x96   :  { %v100_v20 = vpop.f32.mrf.mxu0 }
  0x97   :  { %v101_v21 = vadd.f32 %v504_v11, %v100_v20 }
  0x99   :  { %v128_v22 = vmul.f32 0.01, %v101_v21  ;;  %vm120_vm4 = vcmp.gt.f32.partialorder %v101_v21, 0.0 }
  0x9b   :  { %v136_v23 = vsel %vm120_vm4, %v101_v21, %v128_v22 }
  0x9c   :  { %476 = vmatmul.msk.f32.gmra.mxu1 %vm147_vm1, %v136_v23 }
  0x9e   :  { %v103_v24 = vpop.f32.mrf.mxu0 }
  0x9f   :  { %v104_v25 = vadd.f32 %v504_v11, %v103_v24 }
  0xa1   :  { %v129_v26 = vmul.f32 0.01, %v104_v25  ;;  %vm121_vm5 = vcmp.gt.f32.partialorder %v104_v25, 0.0 }
  0xa3   :  { %v137_v27 = vsel %vm121_vm5, %v104_v25, %v129_v26 }
  0xa4   :  { %477 = vmatmul.msk.f32.gmra.mxu1 %vm147_vm1, %v137_v27 }
  0xa6   :  { %v106_v29 = vpop.f32.mrf.mxu0 }
  0xa7   :  { %v107_v30 = vadd.f32 %v504_v11, %v106_v29 }
  0xa9   :  { %v130_v31 = vmul.f32 0.01, %v107_v30  ;;  %vm122_vm7 = vcmp.gt.f32.partialorder %v107_v30, 0.0 }
  0xab   :  { %v138_v32 = vsel %vm122_vm7, %v107_v30, %v130_v31 }
  0xac   :  { %478 = vmatmul.msk.f32.gmra.mxu1 %vm147_vm1, %v138_v32 }
  0xae   :  { %v109_v33 = vpop.f32.mrf.mxu0 }
  0xaf   :  { %v110_v34 = vadd.f32 %v504_v11, %v109_v33 }
  0xb1   :  { %v131_v35 = vmul.f32 0.01, %v110_v34  ;;  %vm123_vm8 = vcmp.gt.f32.partialorder %v110_v34, 0.0 }
  0xb3   :  { %v139_v36 = vsel %vm123_vm8, %v110_v34, %v131_v35 }
  0xb4   :  { %479 = vmatmul.msk.f32.gmra.mxu1 %vm147_vm1, %v139_v36 }
  0xb6   :  { %v112_v37 = vpop.f32.mrf.mxu0 }
  0xb7   :  { %v113_v38 = vadd.f32 %v504_v11, %v112_v37 }
  0xb9   :  { %v132_v39 = vmul.f32 0.01, %v113_v38  ;;  %vm124_vm9 = vcmp.gt.f32.partialorder %v113_v38, 0.0 }
  0xbb   :  { %v140_v40 = vsel %vm124_vm9, %v113_v38, %v132_v39 }
  0xbc   :  { %480 = vmatmul.msk.f32.gmra.mxu1 %vm147_vm1, %v140_v40 }
  0xbe   :  { %v115_v41 = vpop.f32.mrf.mxu0 }
  0xbf   :  { %v116_v42 = vadd.f32 %v504_v11, %v115_v41 }
  0xc1   :  { %v133_v43 = vmul.f32 0.01, %v116_v42  ;;  %vm125_vm10 = vcmp.gt.f32.partialorder %v116_v42, 0.0 }
  0xc3   :  { %v141_v44 = vsel %vm125_vm10, %v116_v42, %v133_v43 }
  0xc4   :  { %481 = vmatmul.msk.f32.gmra.mxu1 %vm147_vm1, %v141_v44 }
 0x109   :  { %v192_v47 = vpop.f32.mrf.mxu1 }
 0x10a   :  { %v193_v48 = vadd.f32 %v505_v46, %v192_v47 }
 0x10c   :  { %v224_v49 = vmul.f32 0.01, %v193_v48  ;;  %vm216_vm11 = vcmp.gt.f32.partialorder %v193_v48, 0.0 }
 0x10e   :  { %v232_v50 = vsel %vm216_vm11, %v193_v48, %v224_v49 }
 0x10f   :  { %484 = vmatmul.msk.f32.vlgmr.msra.gmra.mxu2 %vm246_vm6, %v232_v50 }
 0x111   :  { %v195_v51 = vpop.f32.mrf.mxu1 }
 0x112   :  { %v196_v52 = vadd.f32 %v505_v46, %v195_v51 }
 0x114   :  { %v225_v53 = vmul.f32 0.01, %v196_v52  ;;  %vm217_vm12 = vcmp.gt.f32.partialorder %v196_v52, 0.0 }
 0x116   :  { %v233_v54 = vsel %vm217_vm12, %v196_v52, %v225_v53  ;;  %v507_v52 = vld [vmem:[%s702_s8] ss:$0 sm:$0xff] }
 0x117   :  { %485 = vmatmul.msk.f32.gmra.mxu2 %vm246_vm6, %v233_v54 }
 0x119   :  { %v198_v55 = vpop.f32.mrf.mxu1 }
 0x11a   :  { %v199_v56 = vadd.f32 %v505_v46, %v198_v55 }
 0x11c   :  { %v226_v57 = vmul.f32 0.01, %v199_v56  ;;  %vm218_vm13 = vcmp.gt.f32.partialorder %v199_v56, 0.0 }
 0x11e   :  { %v234_v58 = vsel %vm218_vm13, %v199_v56, %v226_v57 }
 0x11f   :  { %486 = vmatmul.msk.f32.gmra.mxu2 %vm246_vm6, %v234_v58 }
 0x121   :  { %v201_v59 = vpop.f32.mrf.mxu1 }
 0x122   :  { %v202_v60 = vadd.f32 %v505_v46, %v201_v59 }
 0x124   :  { %v227_v61 = vmul.f32 0.01, %v202_v60  ;;  %vm219_vm14 = vcmp.gt.f32.partialorder %v202_v60, 0.0 }
 0x126   :  { %v235_v62 = vsel %vm219_vm14, %v202_v60, %v227_v61 }
 0x127   :  { %487 = vmatmul.msk.f32.gmra.mxu2 %vm246_vm6, %v235_v62 }
 0x129   :  { %v204_v0 = vpop.f32.mrf.mxu1 }
 0x12a   :  { %v205_v2 = vadd.f32 %v505_v46, %v204_v0 }
 0x12c   :  { %v228_v3 = vmul.f32 0.01, %v205_v2  ;;  %vm220_vm15 = vcmp.gt.f32.partialorder %v205_v2, 0.0 }
 0x12e   :  { %v236_v5 = vsel %vm220_vm15, %v205_v2, %v228_v3 }
 0x12f   :  { %488 = vmatmul.msk.f32.gmra.mxu2 %vm246_vm6, %v236_v5 }
 0x131   :  { %v207_v6 = vpop.f32.mrf.mxu1 }
 0x132   :  { %v208_v7 = vadd.f32 %v505_v46, %v207_v6 }
 0x134   :  { %v229_v8 = vmul.f32 0.01, %v208_v7  ;;  %vm221_vm2 = vcmp.gt.f32.partialorder %v208_v7, 0.0 }
 0x136   :  { %v237_v9 = vsel %vm221_vm2, %v208_v7, %v229_v8 }
 0x137   :  { %489 = vmatmul.msk.f32.gmra.mxu2 %vm246_vm6, %v237_v9 }
 0x139   :  { %v210_v10 = vpop.f32.mrf.mxu1 }
 0x13a   :  { %v211_v11 = vadd.f32 %v505_v46, %v210_v10 }
 0x13c   :  { %v230_v12 = vmul.f32 0.01, %v211_v11  ;;  %vm222_vm3 = vcmp.gt.f32.partialorder %v211_v11, 0.0 }
 0x13e   :  { %v238_v13 = vsel %vm222_vm3, %v211_v11, %v230_v12 }
 0x13f   :  { %490 = vmatmul.msk.f32.gmra.mxu2 %vm246_vm6, %v238_v13 }
 0x141   :  { %v213_v14 = vpop.f32.mrf.mxu1 }
 0x142   :  { %v214_v15 = vadd.f32 %v505_v46, %v213_v14 }
 0x144   :  { %v231_v16 = vmul.f32 0.01, %v214_v15  ;;  %vm223_vm4 = vcmp.gt.f32.partialorder %v214_v15, 0.0 }
 0x146   :  { %v239_v17 = vsel %vm223_vm4, %v214_v15, %v231_v16 }
 0x147   :  { %491 = vmatmul.msk.f32.gmra.mxu2 %vm246_vm6, %v239_v17 }
 0x192   :  { %v294_v20 = vpop.f32.mrf.mxu2 }
 0x193   :  { %v295_v21 = vadd.f32 %v506_v19, %v294_v20 }
 0x195   :  { %v326_v22 = vmul.f32 0.01, %v295_v21  ;;  %vm318_vm5 = vcmp.gt.f32.partialorder %v295_v21, 0.0 }
 0x197   :  { %v334_v23 = vsel %vm318_vm5, %v295_v21, %v326_v22 }
 0x198   :  { %496 = vmatmul.msk.f32.vlgmr.msra.gmra.mxu3 %vm147_vm1, %v334_v23 }
 0x19a   :  { %v297_v24 = vpop.f32.mrf.mxu2 }
 0x19b   :  { %v298_v25 = vadd.f32 %v506_v19, %v297_v24 }
 0x19d   :  { %v327_v26 = vmul.f32 0.01, %v298_v25  ;;  %vm319_vm6 = vcmp.gt.f32.partialorder %v298_v25, 0.0 }
 0x19f   :  { %v335_v27 = vsel %vm319_vm6, %v298_v25, %v327_v26 }
 0x1a0   :  { %497 = vmatmul.msk.f32.gmra.mxu3 %vm147_vm1, %v335_v27 }
 0x1a2   :  { %v300_v28 = vpop.f32.mrf.mxu2 }
 0x1a3   :  { %v301_v29 = vadd.f32 %v506_v19, %v300_v28 }
 0x1a5   :  { %v328_v30 = vmul.f32 0.01, %v301_v29  ;;  %vm320_vm7 = vcmp.gt.f32.partialorder %v301_v29, 0.0 }
 0x1a7   :  { %v336_v31 = vsel %vm320_vm7, %v301_v29, %v328_v30 }
 0x1a8   :  { %498 = vmatmul.msk.f32.gmra.mxu3 %vm147_vm1, %v336_v31 }
 0x1aa   :  { %v303_v32 = vpop.f32.mrf.mxu2 }
 0x1ab   :  { %v304_v33 = vadd.f32 %v506_v19, %v303_v32 }
 0x1ad   :  { %v329_v34 = vmul.f32 0.01, %v304_v33  ;;  %vm321_vm8 = vcmp.gt.f32.partialorder %v304_v33, 0.0 }
 0x1af   :  { %v337_v35 = vsel %vm321_vm8, %v304_v33, %v329_v34 }
 0x1b0   :  { %499 = vmatmul.msk.f32.gmra.mxu3 %vm147_vm1, %v337_v35 }
 0x1b2   :  { %v306_v36 = vpop.f32.mrf.mxu2 }
 0x1b3   :  { %v307_v37 = vadd.f32 %v506_v19, %v306_v36 }
 0x1b5   :  { %v330_v38 = vmul.f32 0.01, %v307_v37  ;;  %vm322_vm9 = vcmp.gt.f32.partialorder %v307_v37, 0.0 }
 0x1b7   :  { %v338_v39 = vsel %vm322_vm9, %v307_v37, %v330_v38 }
 0x1b8   :  { %500 = vmatmul.msk.f32.gmra.mxu3 %vm147_vm1, %v338_v39 }
 0x1ba   :  { %v309_v40 = vpop.f32.mrf.mxu2 }
 0x1bb   :  { %v310_v41 = vadd.f32 %v506_v19, %v309_v40 }
 0x1bd   :  { %v331_v42 = vmul.f32 0.01, %v310_v41  ;;  %vm323_vm10 = vcmp.gt.f32.partialorder %v310_v41, 0.0 }
 0x1bf   :  { %v339_v43 = vsel %vm323_vm10, %v310_v41, %v331_v42 }
 0x1c0   :  { %501 = vmatmul.msk.f32.gmra.mxu3 %vm147_vm1, %v339_v43 }
 0x1c2   :  { %v312_v44 = vpop.f32.mrf.mxu2 }
 0x1c3   :  { %v313_v45 = vadd.f32 %v506_v19, %v312_v44 }
 0x1c5   :  { %v332_v46 = vmul.f32 0.01, %v313_v45  ;;  %vm324_vm11 = vcmp.gt.f32.partialorder %v313_v45, 0.0 }
 0x1c7   :  { %v340_v47 = vsel %vm324_vm11, %v313_v45, %v332_v46 }
 0x1c8   :  { %502 = vmatmul.msk.f32.gmra.mxu3 %vm147_vm1, %v340_v47 }
 0x1ca   :  { %v315_v48 = vpop.f32.mrf.mxu2 }
 0x1cb   :  { %v316_v49 = vadd.f32 %v506_v19, %v315_v48 }
 0x1cd   :  { %v333_v50 = vmul.f32 0.01, %v316_v49  ;;  %vm325_vm12 = vcmp.gt.f32.partialorder %v316_v49, 0.0 }
 0x1cf   :  { %v341_v51 = vsel %vm325_vm12, %v316_v49, %v333_v50 }
 0x1d0   :  { %503 = vmatmul.msk.f32.gmra.mxu3 %vm147_vm1, %v341_v51 }
 0x21b   :  { %v403_v53 = vpop.f32.mrf.mxu3 }
 0x21c   :  { %v404_v54 = vadd.f32 %v507_v52, %v403_v53 }
 0x21e   :  { %vm427_vm13 = vcmp.gt.f32.partialorder %v404_v54, 0.0  ;;  %v435_v55 = vmul.f32 0.01, %v404_v54 }
 0x220   :  { %v443_v56 = vsel %vm427_vm13, %v404_v54, %v435_v55 }
 0x221   :  { %451 = vst.msk [vmem:[%s703_s9] sm:$0xff] %vm46_vm0, %v443_v56 }
 0x223   :  { %v406_v57 = vpop.f32.mrf.mxu3 }
 0x224   :  { %v407_v58 = vadd.f32 %v507_v52, %v406_v57 }
 0x226   :  { %vm428_vm14 = vcmp.gt.f32.partialorder %v407_v58, 0.0  ;;  %v436_v59 = vmul.f32 0.01, %v407_v58 }
 0x228   :  { %v444_v60 = vsel %vm428_vm14, %v407_v58, %v436_v59 }
 0x229   :  { %452 = vst.msk [vmem:[%s703_s9 + $0x8] sm:$0xff] %vm46_vm0, %v444_v60 }
 0x22b   :  { %v409_v61 = vpop.f32.mrf.mxu3 }
 0x22c   :  { %v410_v62 = vadd.f32 %v507_v52, %v409_v61 }
 0x22e   :  { %vm429_vm1 = vcmp.gt.f32.partialorder %v410_v62, 0.0  ;;  %v437_v63 = vmul.f32 0.01, %v410_v62 }
 0x230   :  { %v445_v0 = vsel %vm429_vm1, %v410_v62, %v437_v63 }
 0x231   :  { %453 = vst.msk [vmem:[%s703_s9 + $0x10] sm:$0xff] %vm46_vm0, %v445_v0 }
 0x233   :  { %v412_v1 = vpop.f32.mrf.mxu3 }
 0x234   :  { %v413_v2 = vadd.f32 %v507_v52, %v412_v1 }
 0x236   :  { %vm430_vm15 = vcmp.gt.f32.partialorder %v413_v2, 0.0  ;;  %v438_v3 = vmul.f32 0.01, %v413_v2 }
 0x238   :  { %v446_v4 = vsel %vm430_vm15, %v413_v2, %v438_v3 }
 0x239   :  { %454 = vst.msk [vmem:[%s703_s9 + $0x18] sm:$0xff] %vm46_vm0, %v446_v4 }
 0x23b   :  { %v415_v5 = vpop.f32.mrf.mxu3 }
 0x23c   :  { %v416_v6 = vadd.f32 %v507_v52, %v415_v5 }
 0x23e   :  { %vm431_vm2 = vcmp.gt.f32.partialorder %v416_v6, 0.0  ;;  %v439_v7 = vmul.f32 0.01, %v416_v6 }
 0x240   :  { %v447_v8 = vsel %vm431_vm2, %v416_v6, %v439_v7 }
 0x241   :  { %455 = vst.msk [vmem:[%s703_s9 + $0x20] sm:$0xff] %vm46_vm0, %v447_v8 }
 0x243   :  { %v418_v9 = vpop.f32.mrf.mxu3 }
 0x244   :  { %v419_v10 = vadd.f32 %v507_v52, %v418_v9 }
 0x246   :  { %vm432_vm3 = vcmp.gt.f32.partialorder %v419_v10, 0.0  ;;  %v440_v11 = vmul.f32 0.01, %v419_v10 }
 0x248   :  { %v448_v12 = vsel %vm432_vm3, %v419_v10, %v440_v11 }
 0x249   :  { %456 = vst.msk [vmem:[%s703_s9 + $0x28] sm:$0xff] %vm46_vm0, %v448_v12 }
 0x24b   :  { %v421_v13 = vpop.f32.mrf.mxu3 }
 0x24c   :  { %v422_v14 = vadd.f32 %v507_v52, %v421_v13 }
 0x24e   :  { %vm433_vm4 = vcmp.gt.f32.partialorder %v422_v14, 0.0  ;;  %v441_v15 = vmul.f32 0.01, %v422_v14 }
 0x250   :  { %v449_v16 = vsel %vm433_vm4, %v422_v14, %v441_v15 }
 0x251   :  { %457 = vst.msk [vmem:[%s703_s9 + $0x30] sm:$0xff] %vm46_vm0, %v449_v16 }
 0x253   :  { %v424_v17 = vpop.f32.mrf.mxu3 }
 0x254   :  { %v425_v18 = vadd.f32 %v507_v52, %v424_v17 }
 0x256   :  { %vm434_vm5 = vcmp.gt.f32.partialorder %v425_v18, 0.0  ;;  %v442_v19 = vmul.f32 0.01, %v425_v18 }
 0x258   :  { %v450_v20 = vsel %vm434_vm5, %v425_v18, %v442_v19 }
 0x259   :  { %458 = vst.msk [vmem:[%s703_s9 + $0x38] sm:$0xff] %vm46_vm0, %v450_v20 }

</bundles_post_ra>
